<compile_context>
chip_gen: v6e
topology: v6e:2x2x1
jax: 0.10.0
libtpu: 0.0.40
codegen_flags: <defaults>
</compile_context>

<pallas_src>
import functools

import jax
import jax.numpy as jnp
from jax.experimental import pallas as pl
from jax.experimental.pallas import tpu as pltpu

_LANE = 128
_CHUNK_ROWS = 1024                    # in-kernel compute chunk (512 KiB f32 temps)
_BLOCK_BYTES_SMALL = 2 * 1024 * 1024  # per input, per pipeline buffer (v5e & unknown)
_BLOCK_BYTES_LARGE = 4 * 1024 * 1024  # v6e / v7x


def _device_kind():
    try:
        return jax.devices()[0].device_kind.lower()
    except Exception:
        return ""


def _masked_mse_kernel(x_ref, t_ref, o_ref, *, masked_with, total_rows,
                       block_rows, chunk_rows, blocks_per_split, acc_rows,
                       needs_mask):
    p = pl.program_id(0)   # parallel split (sharded across TensorCores on v7x)
    i = pl.program_id(1)   # reduction step within the split

    @pl.when(i == 0)
    def _zero():
        o_ref[...] = jnp.zeros_like(o_ref)

    block_idx = p * blocks_per_split + i
    row_start = block_idx * block_rows
    n_chunks = block_rows // chunk_rows

    def _partial(tail_limit):
        # tail_limit is None for interior blocks; otherwise the (traced) number
        # of valid rows in this block.
        acc = jnp.zeros((acc_rows, _LANE), jnp.float32)
        for c in range(n_chunks):
            r0 = c * chunk_rows
            # Native-dtype loads; sentinel compare in the native dtype (matches
            # PyTorch's `target == masked_with`); upcast once for the math.
            t_nat = t_ref[pl.ds(r0, chunk_rows), :]
            x = x_ref[pl.ds(r0, chunk_rows), :].astype(jnp.float32)
            t = t_nat.astype(jnp.float32)
            d = x - t
            contrib = jnp.where(t_nat != masked_with, d * d, jnp.float32(0.0))
            if tail_limit is not None:
                # (rows, 1) sublane iota; lane dim handled by broadcasting.
                rows = r0 + jax.lax.broadcasted_iota(
                    jnp.int32, (chunk_rows, 1), 0)
                contrib = jnp.where(rows < tail_limit, contrib,
                                    jnp.float32(0.0))
            # Pure-VPU partial reduction into a vreg-sized accumulator.
            acc = acc + jnp.sum(contrib.reshape(-1, acc_rows, _LANE), axis=0)
        return acc

    if not needs_mask:
        # Every block is full and real: zero bounds work on the hot path.
        o_ref[...] += _partial(None)
    else:
        block_end = row_start + block_rows

        # Fast path: interior blocks pay only the sentinel mask.
        @pl.when(block_end <= total_rows)
        def _interior():
            o_ref[...] += _partial(None)

        # Ragged last block: mask rows past the logical end.  Clamped duplicate
        # blocks (row_start >= total_rows) skip accumulation entirely.
        @pl.when(jnp.logical_and(row_start < total_rows,
                                 block_end > total_rows))
        def _tail():
            o_ref[...] += _partial(total_rows - row_start)


def masked_mse_loss(x, target, masked_with=-1, *, _block_rows=None,
                    _num_splits=None):
    """Pallas TPU masked-MSE sum (MaskedMSELoss.forward). Returns scalar f32."""
    target = target.reshape(x.shape)   # target.view(input.shape)

    xf = x.reshape(-1)
    tf = target.reshape(-1)
    n = xf.shape[0]

    # Only the sub-lane remainder (< 128 elements) needs padding; padded target
    # elements carry the sentinel so they are masked out in-kernel.
    # TODO(synk): a flat-index-masked 1D variant could consume the unpadded
    # buffers directly and skip this copy for n % 128 != 0.
    pad = (-n) % _LANE
    if pad:
        xf = jnp.pad(xf, (0, pad))
        tf = jnp.pad(tf, (0, pad), constant_values=masked_with)

    total_rows = (n + pad) // _LANE
    x2 = xf.reshape(total_rows, _LANE)
    t2 = tf.reshape(total_rows, _LANE)

    # Chip-aware sizing: bigger DMA blocks where VMEM allows, 2-way TC split
    # only on dual-TensorCore parts (v7x).
    kind = _device_kind()
    block_bytes = (_BLOCK_BYTES_LARGE if ("v6" in kind or "v7" in kind)
                   else _BLOCK_BYTES_SMALL)
    itemsize = jnp.dtype(x.dtype).itemsize
    max_rows = block_bytes // (_LANE * itemsize)
    max_rows = max(_CHUNK_ROWS, (max_rows // _CHUNK_ROWS) * _CHUNK_ROWS)

    if _block_rows is not None:
        block_rows = min(_block_rows, total_rows)
    elif total_rows <= _CHUNK_ROWS:
        block_rows = total_rows                       # single full-extent block
    else:
        block_rows = min(max_rows, (total_rows // _CHUNK_ROWS) * _CHUNK_ROWS)

    chunk_rows = min(block_rows, _CHUNK_ROWS)
    if block_rows % chunk_rows != 0:
        chunk_rows = block_rows
    acc_rows = 8 if chunk_rows % 8 == 0 else 1        # tiny-input fallback

    num_blocks = pl.cdiv(total_rows, block_rows)
    if _num_splits is not None:
        num_splits = _num_splits if num_blocks >= _num_splits else 1
    else:
        num_splits = 2 if ("v7" in kind and num_blocks >= 2) else 1
    blocks_per_split = pl.cdiv(num_blocks, num_splits)

    # Any ragged last block or clamped duplicate block?  If not, the kernel is
    # compiled without any bounds masking at all.
    needs_mask = (total_rows % block_rows != 0) or \
                 (num_splits * blocks_per_split != num_blocks)

    def in_map(p, i):
        # Clamp so an uneven split never indexes past the last block; clamped
        # duplicate blocks skip accumulation inside the kernel.
        return (jnp.minimum(p * blocks_per_split + i, num_blocks - 1), 0)

    kernel = functools.partial(
        _masked_mse_kernel,
        masked_with=masked_with,
        total_rows=total_rows,
        block_rows=block_rows,
        chunk_rows=chunk_rows,
        blocks_per_split=blocks_per_split,
        acc_rows=acc_rows,
        needs_mask=needs_mask,
    )

    out_rows = num_splits * acc_rows
    cost = pl.CostEstimate(
        flops=3 * int(n),
        transcendentals=0,
        bytes_accessed=int(n) * (int(jnp.dtype(x.dtype).itemsize)
                                 + int(jnp.dtype(target.dtype).itemsize))
        + out_rows * _LANE * 4,
    )

    partials = pl.pallas_call(
        kernel,
        out_shape=jax.ShapeDtypeStruct((out_rows, _LANE), jnp.float32),
        grid_spec=pltpu.PrefetchScalarGridSpec(
            num_scalar_prefetch=0,
            grid=(num_splits, blocks_per_split),
            in_specs=[
                pl.BlockSpec((block_rows, _LANE), in_map),
                pl.BlockSpec((block_rows, _LANE), in_map),
            ],
            # Output block index is constant over the reduction axis -> stays
            # VMEM-resident and is accumulated into directly (no scratch).
            out_specs=pl.BlockSpec((acc_rows, _LANE), lambda p, i: (p, 0)),
        ),
        compiler_params=pltpu.CompilerParams(
            dimension_semantics=("parallel", "arbitrary"),
        ),
        cost_estimate=cost,
    )(x2, t2)

    # Tiny final cross-lane reduce (<= 2*8*128 elements) done by XLA.
    return jnp.sum(partials)


def _reference(x, target, masked_with=-1):
    target = target.reshape(x.shape).astype(jnp.float32)
    x = x.astype(jnp.float32)
    loss = (x - target) ** 2
    loss = jnp.where(target == masked_with, 0.0, loss)
    return jnp.sum(loss)


def _make_case(key, shape, dtype=jnp.float32):
    k1, k2, k3 = jax.random.split(key, 3)
    x = jax.random.normal(k1, shape, dtype=jnp.float32)
    target = jax.random.normal(k2, shape, dtype=jnp.float32)
    mask = jax.random.bernoulli(k3, p=0.25, shape=shape)
    target = jnp.where(mask, jnp.float32(-1.0), target)
    return x.astype(dtype), target.astype(dtype)


if __name__ == "__main__":
    key = jax.random.PRNGKey(0)
    k_main, k_rag, k_multi = jax.random.split(key, 3)

    # Primary case: NCHW-like input (batch=2, channels=4, spatial=16x16),
    # target arrives flattened (exercises the .view(input.shape) path).
    x, target = _make_case(k_main, (2, 4, 16, 16))
    target_flat = target.reshape(-1)
    loss = jax.block_until_ready(masked_mse_loss(x, target_flat, masked_with=-1))
    ref = _reference(x, target_flat, masked_with=-1)
    assert jnp.allclose(loss, ref, rtol=1e-5, atol=1e-3), (loss, ref)

    # bf16 inputs: native-dtype reads + in-kernel upcast, native sentinel compare.
    x_bf, t_bf = x.astype(jnp.bfloat16), target.astype(jnp.bfloat16)
    loss_bf = jax.block_until_ready(
        masked_mse_loss(x_bf, t_bf.reshape(-1), masked_with=-1))
    ref_bf = _reference(x_bf, t_bf.reshape(-1), masked_with=-1)
    assert jnp.allclose(loss_bf, ref_bf, rtol=1e-4, atol=1e-3), (loss_bf, ref_bf)

    # Ragged size (not a multiple of 128): exercises the sub-lane pad path.
    xr, tr = _make_case(k_rag, (3, 5, 7, 9))
    loss_r = jax.block_until_ready(
        masked_mse_loss(xr, tr.reshape(-1), masked_with=-1))
    ref_r = _reference(xr, tr.reshape(-1), masked_with=-1)
    assert jnp.allclose(loss_r, ref_r, rtol=1e-5, atol=1e-3), (loss_r, ref_r)

    # Forced small tiling + 2-way split: exercises the interior fast path, the
    # masked ragged-tail path and the skipped clamped-duplicate block
    # (2500 rows -> 5 blocks of 512, 2 splits of 3 steps).
    xm, tm = _make_case(k_multi, (5, 4, 160, 100))
    ref_m = _reference(xm, tm.reshape(-1), masked_with=-1)
    loss_m = jax.block_until_ready(
        masked_mse_loss(xm, tm.reshape(-1), masked_with=-1,
                        _block_rows=512, _num_splits=2))
    assert jnp.allclose(loss_m, ref_m, rtol=1e-5, atol=1e-2), (loss_m, ref_m)

    # Same data through the automatic (device-sized) tiling path.
    loss_a = jax.block_until_ready(
        masked_mse_loss(xm, tm.reshape(-1), masked_with=-1))
    assert jnp.allclose(loss_a, ref_m, rtol=1e-5, atol=1e-2), (loss_a, ref_m)

    print("KERNEL_OK")
</pallas_src>

<mosaic_0001>
module attributes {stable_mosaic.version = 11 : i64} {
  func.func @_masked_mse_kernel(%arg0: i32, %arg1: i32, %arg2: memref<16x128xf32, #tpu.memory_space<vmem>>, %arg3: memref<16x128xf32, #tpu.memory_space<vmem>>, %arg4: memref<8x128xf32, #tpu.memory_space<vmem>>) attributes {dimension_semantics = [#tpu.dimension_semantics<parallel>, #tpu.dimension_semantics<arbitrary>], iteration_bounds = array<i64: 1, 1>, scalar_prefetch = 0 : i64, scratch_operands = 0 : i64, tpu.core_type = #tpu.core_type<tc>, window_params = [{transform_indices = @transform_0, window_bounds = array<i64: 16, 128>}, {transform_indices = @transform_1, window_bounds = array<i64: 16, 128>}, {transform_indices = @transform_2, window_bounds = array<i64: 8, 128>}]} {
    %c0_i32 = arith.constant 0 : i32
    %0 = arith.cmpi eq, %arg1, %c0_i32 : i32
    %1 = arith.extui %0 : i1 to i32
    %c0_i32_0 = arith.constant 0 : i32
    %2 = arith.cmpi ne, %1, %c0_i32_0 : i32
    scf.if %2 {
      %cst_11 = arith.constant 0.000000e+00 : f32
      %18 = vector.broadcast %cst_11 : f32 to vector<8x128xf32>
      %c0_12 = arith.constant 0 : index
      %c0_13 = arith.constant 0 : index
      %19 = vector.load %arg4[%c0_12, %c0_13] : memref<8x128xf32, #tpu.memory_space<vmem>>, vector<8x128xf32>
      tpu.vector_store %arg4[%c0_12, %c0_13], %18 {strides = array<i32>} : memref<8x128xf32, #tpu.memory_space<vmem>>, vector<8x128xf32>,
    } else {
    }
    %c0 = arith.constant 0 : index
    %c0_1 = arith.constant 0 : index
    %3 = vector.load %arg4[%c0, %c0_1] : memref<8x128xf32, #tpu.memory_space<vmem>>, vector<8x128xf32>
    %cst = arith.constant 0.000000e+00 : f32
    %4 = vector.broadcast %cst : f32 to vector<8x128xf32>
    %c0_2 = arith.constant 0 : index
    %c0_3 = arith.constant 0 : index
    %5 = vector.load %arg3[%c0_2, %c0_3] : memref<16x128xf32, #tpu.memory_space<vmem>>, vector<16x128xf32>
    %c0_4 = arith.constant 0 : index
    %c0_5 = arith.constant 0 : index
    %6 = vector.load %arg2[%c0_4, %c0_5] : memref<16x128xf32, #tpu.memory_space<vmem>>, vector<16x128xf32>
    %7 = arith.subf %6, %5 : vector<16x128xf32>
    %cst_6 = arith.constant -1.000000e+00 : f32
    %8 = vector.broadcast %cst_6 : f32 to vector<16x128xf32>
    %9 = arith.cmpf one, %5, %8 : vector<16x128xf32>
    %10 = arith.mulf %7, %7 : vector<16x128xf32>
    %cst_7 = arith.constant 0.000000e+00 : f32
    %11 = vector.broadcast %cst_7 : f32 to vector<16x128xf32>
    %12 = arith.select %9, %10, %11 : vector<16x128xi1>, vector<16x128xf32>
    %13 = vector.shape_cast %12 : vector<16x128xf32> to vector<2x8x128xf32>
    %cst_8 = arith.constant dense<0.000000e+00> : vector<8x128xf32>
    %14 = vector.multi_reduction <add>, %13, %cst_8 [0] : vector<2x8x128xf32> to vector<8x128xf32>
    %15 = arith.addf %4, %14 : vector<8x128xf32>
    %16 = arith.addf %3, %15 : vector<8x128xf32>
    %c0_9 = arith.constant 0 : index
    %c0_10 = arith.constant 0 : index
    %17 = vector.load %arg4[%c0_9, %c0_10] : memref<8x128xf32, #tpu.memory_space<vmem>>, vector<8x128xf32>
    tpu.vector_store %arg4[%c0_9, %c0_10], %16 {strides = array<i32>} : memref<8x128xf32, #tpu.memory_space<vmem>>, vector<8x128xf32>,
    return
  }
  func.func @transform_0(%arg0: i32, %arg1: i32) -> (i32, i32) {
    %c1_i32 = arith.constant 1 : i32
    %0 = arith.muli %arg0, %c1_i32 : i32
    %1 = arith.addi %0, %arg1 : i32
    %c0_i32 = arith.constant 0 : i32
    %2 = arith.minsi %1, %c0_i32 : i32
    %c0_i32_0 = arith.constant 0 : i32
    %c0_i32_1 = arith.constant 0 : i32
    return %2, %c0_i32_0 : i32, i32
  }
  func.func @transform_1(%arg0: i32, %arg1: i32) -> (i32, i32) {
    %c1_i32 = arith.constant 1 : i32
    %0 = arith.muli %arg0, %c1_i32 : i32
    %1 = arith.addi %0, %arg1 : i32
    %c0_i32 = arith.constant 0 : i32
    %2 = arith.minsi %1, %c0_i32 : i32
    %c0_i32_0 = arith.constant 0 : i32
    %c0_i32_1 = arith.constant 0 : i32
    return %2, %c0_i32_0 : i32, i32
  }
  func.func @transform_2(%arg0: i32, %arg1: i32) -> (i32, i32) {
    %c0_i32 = arith.constant 0 : i32
    %c0_i32_0 = arith.constant 0 : i32
    return %arg0, %c0_i32 : i32, i32
  }
}

</mosaic_0001>

<bundles_post_ra>
// kernel: tpu_custom_call.1
= control target key start
LH: loop header
LB: loop body
LE: loop exit
PB: predicated region body
PF: predicated region fallthrough
CT: control target
= control target key end

     0   :  { %7 = vsyncpa [#allocation3], 0  ;;  %s203_s0 = inlined_call_operand.hbm [shape: f32[16,128], index: 0, kind: input, shape index: {}]   ;;  %s204_s1 = inlined_call_operand.hbm [shape: f32[16,128], index: 1, kind: input, shape index: {}]   ;;  %s205_s2 = inlined_call_operand.hbm [shape: f32[8,128], index: 2, kind: output, shape index: {}]  }
   0x1   :  { %8 = vsyncpa [#allocation6], 0 }
   0x2   :  { %9 = vsyncpa [#allocation4], 0  ;;  %s174_s9 = smov [#allocation2]  }
   0x3   :  { %s21_s10 = sshll.u32 %s174_s9, 4  ;;  %s22_s10 = int_to_ptr.vmem [resolvable:$true] %s21_s10 }
   0x4   :  { %s116_s11 = scalar_lea.vmem %s22_s10, 256  ;;  %p121_p1 = scmp.lt.s32.totalorder %s22_s10, %s22_s10 }
   0x5   :  { %p117_p0 = scmp.ne.s32.totalorder %s22_s10, %s116_s11  ;;  %p122_p2 = scmp.lt.s32.totalorder %s116_s11, %s116_s11 }
   0x7   :  { %p123_p3 = por %p122_p2, %p121_p1 }
   0x9   :  { %p124_p4 = pnand %p123_p3, %p117_p0 }
   0xb   :  { %127 = shalt.err (!%p124_p4)
}
   0xc   :  { %s175_s12 = smov 128   ;;  %s176_s13 = smov 8  }
   0xd   :  { %27 = dma.hbm_to_vmem [thread:$0]  %s203_s0, 256, %s22_s10, [#allocation3], %s175_s12, %s175_s12, %s176_s13  }
   0xe   :  { %s177_s16 = smov [#allocation5]  }
   0xf   :  { %s39_s17 = sshll.u32 %s177_s16, 4  ;;  %s40_s17 = int_to_ptr.vmem [resolvable:$true] %s39_s17 }
  0x10   :  { %s136_s18 = scalar_lea.vmem %s40_s17, 256  ;;  %p141_p6 = scmp.lt.s32.totalorder %s40_s17, %s40_s17 }
  0x11   :  { %p137_p5 = scmp.ne.s32.totalorder %s40_s17, %s136_s18  ;;  %p142_p7 = scmp.lt.s32.totalorder %s136_s18, %s136_s18 }
  0x13   :  { %p143_p8 = por %p142_p7, %p141_p6 }
  0x15   :  { %p144_p9 = pnand %p143_p8, %p137_p5 }
  0x17   :  { %147 = shalt.err (!%p144_p9)
}
  0x18   :  { %45 = dma.hbm_to_vmem [thread:$0]  %s204_s1, 256, %s40_s17, [#allocation6], %s175_s12, %s175_s12, %s176_s13  }
  0x19   :  { %168 = dma.done.wait [#allocation3], 256  }
  0x1a   :  { %169 = vsyncadd [#allocation3], 4294967040 }
  0x1b   :  { %170 = dma.done.wait [#allocation6], 256  }
  0x1c   :  { %171 = vsyncadd [#allocation6], 4294967040  ;;  %v66_v0 = vld [vmem:[#allocation5] sm:$0xff]  ;;  %v67_v1 = vld [vmem:[#allocation5 + $0x8] sm:$0xff]  ;;  %s178_s0 = smov [#allocation7]  }
  0x1d   :  { %v68_v2 = vld [vmem:[#allocation2] sm:$0xff]  ;;  %v69_v3 = vld [vmem:[#allocation2 + $0x8] sm:$0xff]  ;;  %vm72_vm0 = vcmp.ne.f32.partialorder %v66_v0, -1.0  ;;  %vm73_vm1 = vcmp.ne.f32.partialorder %v67_v1, -1.0  ;;  %s88_s21 = sshll.u32 %s178_s0, 4  ;;  %s89_s21 = int_to_ptr.vmem [resolvable:$true] %s88_s21 }
  0x1e   :  { %v70_v4 = vsub.f32 %v68_v2, %v66_v0  ;;  %v71_v5 = vsub.f32 %v69_v3, %v67_v1  ;;  %s148_s1 = scalar_lea.vmem %s89_s21, 128  ;;  %p153_p11 = scmp.lt.s32.totalorder %s89_s21, %s89_s21 }
  0x1f   :  { %p149_p10 = scmp.ne.s32.totalorder %s89_s21, %s148_s1  ;;  %p154_p12 = scmp.lt.s32.totalorder %s148_s1, %s148_s1 }
  0x20   :  { %v74_v6 = vmul.f32 %v70_v4, %v70_v4  ;;  %v75_v7 = vmul.f32 %v71_v5, %v71_v5 }
  0x21   :  { %p155_p13 = por %p154_p12, %p153_p11 }
  0x22   :  { %v76_v8 = vsel %vm72_vm0, %v74_v6, 0.0  ;;  %v77_v9 = vsel %vm73_vm1, %v75_v7, 0.0 }
  0x23   :  { %v78_v10 = vadd.f32 %v77_v9, %v76_v8  ;;  %p156_p0 = pnand %p155_p13, %p149_p10 }
  0x25   :  { %81 = vst [vmem:[#allocation7] sm:$0xff] %v78_v10 }
  0x26   :  { %159 = shalt.err (!%p156_p0)
}
  0x27   :  { %91 = dma.vmem_to_hbm [thread:$0]  %s89_s21, 128, %s205_s2, [#allocation4]  }
  0x28   :  { %172 = dma.done.wait [#allocation4], 128  }
  0x29   :  { %173 = vsyncadd [#allocation4], 4294967168 }
  0x2a   :  { %95 = vsyncpa [#allocation3], 1 }
  0x2b   :  { %96 = vsyncpa [#allocation6], 1 }
  0x2c   :  { %97 = vsyncpa [#allocation4], 1 }

</bundles_post_ra>
